<compile_context>
chip_gen: v6e
topology: v6e:2x2x1
jax: 0.10.0
libtpu: 0.0.40
codegen_flags: <defaults>
</compile_context>

<pallas_src>
from functools import partial

import numpy as np
import jax
import jax.numpy as jnp
from jax.experimental import pallas as pl
from jax.experimental.pallas import tpu as pltpu

LANE = 128
SUBLANE = 8
CHUNK = SUBLANE * LANE          # 1024 elements: minimal aligned unit
SUB_ROWS = 64                   # inner sub-tile rows (8 vregs/input in f32)
MAX_BLOCK_ROWS = 4096           # 4096x128 f32 = 2 MiB per input per buffer


def _block_partial_sums(x_ref, y_ref, valid_rows):
    """(8,128) partial sums of sigmoid(x)*y and sigmoid(x)+y over the first
    `valid_rows` rows of the current block. `valid_rows` is a static Python
    int and a multiple of 8, so no per-element masking is ever needed."""

    def chunk_sums(xs, ys):
        xs = xs.astype(jnp.float32)
        ys = ys.astype(jnp.float32)
        # sigmoid(x) = 0.5 * tanh(0.5 * x) + 0.5  -> one EUP push per vreg
        sx = 0.5 * jnp.tanh(0.5 * xs) + 0.5
        r = xs.shape[0]
        pi = (sx * ys).reshape(r // SUBLANE, SUBLANE, LANE).sum(axis=0)
        pt = (sx + ys).reshape(r // SUBLANE, SUBLANE, LANE).sum(axis=0)
        return pi, pt

    zeros = jnp.zeros((SUBLANE, LANE), jnp.float32)
    acc_i, acc_t = zeros, zeros

    n_sub = valid_rows // SUB_ROWS
    rem = valid_rows - n_sub * SUB_ROWS          # multiple of 8, < SUB_ROWS

    if n_sub > 0:
        def body(j, carry):
            ai, at = carry
            off = pl.multiple_of(j * SUB_ROWS, SUB_ROWS)
            pi, pt = chunk_sums(x_ref[pl.ds(off, SUB_ROWS), :],
                                y_ref[pl.ds(off, SUB_ROWS), :])
            return ai + pi, at + pt

        acc_i, acc_t = jax.lax.fori_loop(0, n_sub, body, (acc_i, acc_t),
                                         unroll=2)

    if rem > 0:
        start = n_sub * SUB_ROWS
        pi, pt = chunk_sums(x_ref[start:start + rem, :],
                            y_ref[start:start + rem, :])
        acc_i, acc_t = acc_i + pi, acc_t + pt

    return acc_i, acc_t


def _ts_partial_kernel(x_ref, y_ref, inter_ref, total_ref, *,
                       block_rows, last_rows, num_blocks):
    def emit(valid_rows):
        acc_i, acc_t = _block_partial_sums(x_ref, y_ref, valid_rows)
        inter_ref[0] = acc_i
        total_ref[0] = acc_t

    if last_rows == block_rows:
        # Blocks tile the rows exactly: one clean path for every grid step.
        emit(block_rows)
    else:
        # Only the final block is partial; the masked-size path is compiled
        # (and executed) for that single step only.
        i = pl.program_id(0)

        @pl.when(i != num_blocks - 1)
        def _():
            emit(block_rows)

        @pl.when(i == num_blocks - 1)
        def _():
            emit(last_rows)


def ts_loss(inputs, targets, smooth=1.0, *, max_block_rows=MAX_BLOCK_ROWS):
    x = inputs.reshape(-1)          # free reshape, native dtype
    y = targets.reshape(-1)
    n = x.shape[0]
    smooth = float(smooth)

    n_main = (n // CHUNK) * CHUNK   # largest multiple of 8*128

    inter = jnp.float32(0.0)
    total = jnp.float32(0.0)

    if n_main > 0:
        if n_main == n:
            xm, ym = x, y           # fully zero-copy path
        else:
            # TODO(synk): avoid this prefix-slice copy for ragged sizes by
            # passing the flat arrays with memory_space=pl.ANY and doing a
            # manually tail-masked DMA inside the kernel.
            xm, ym = x[:n_main], y[:n_main]

        rows = n_main // LANE                      # multiple of 8
        xm = xm.reshape(rows, LANE)
        ym = ym.reshape(rows, LANE)

        block_rows = min(max_block_rows, rows)
        num_blocks = -(-rows // block_rows)
        last_rows = rows - (num_blocks - 1) * block_rows

        out_bytes = 2 * num_blocks * SUBLANE * LANE * 4
        in_bytes = n_main * (xm.dtype.itemsize + ym.dtype.itemsize)

        inter_p, total_p = pl.pallas_call(
            partial(_ts_partial_kernel, block_rows=block_rows,
                    last_rows=last_rows, num_blocks=num_blocks),
            out_shape=(
                jax.ShapeDtypeStruct((num_blocks, SUBLANE, LANE), jnp.float32),
                jax.ShapeDtypeStruct((num_blocks, SUBLANE, LANE), jnp.float32),
            ),
            grid_spec=pltpu.PrefetchScalarGridSpec(
                num_scalar_prefetch=0,
                grid=(num_blocks,),
                in_specs=[
                    pl.BlockSpec((block_rows, LANE), lambda i: (i, 0)),
                    pl.BlockSpec((block_rows, LANE), lambda i: (i, 0)),
                ],
                out_specs=(
                    pl.BlockSpec((1, SUBLANE, LANE), lambda i: (i, 0, 0)),
                    pl.BlockSpec((1, SUBLANE, LANE), lambda i: (i, 0, 0)),
                ),
            ),
            compiler_params=pltpu.CompilerParams(
                # Independent per-block partials -> shards across TensorCores
                # on multi-core chips (v7x), plain sequential loop elsewhere.
                dimension_semantics=("parallel",),
            ),
            cost_estimate=pl.CostEstimate(
                flops=6 * n_main,
                transcendentals=n_main,
                bytes_accessed=in_bytes + out_bytes,
            ),
        )(xm, ym)

        inter = inter + jnp.sum(inter_p)
        total = total + jnp.sum(total_p)

    if n_main < n:
        # Ragged tail (< 1024 elements): trivial plain-JAX partial sums.
        xt = x[n_main:].astype(jnp.float32)
        yt = y[n_main:].astype(jnp.float32)
        sxt = jax.nn.sigmoid(xt)
        inter = inter + jnp.sum(sxt * yt)
        total = total + jnp.sum(sxt + yt)

    union = total - inter
    iou = (inter + smooth) / (union + smooth)
    return jnp.float32(1.0) - iou


def _reference(inputs, targets, smooth=1.0):
    x = jax.nn.sigmoid(inputs.reshape(-1).astype(jnp.float32))
    y = targets.reshape(-1).astype(jnp.float32)
    inter = jnp.sum(x * y)
    total = jnp.sum(x + y)
    union = total - inter
    iou = (inter + smooth) / (union + smooth)
    return 1.0 - iou


if __name__ == "__main__":
    key = jax.random.PRNGKey(0)
    keys = jax.random.split(key, 10)

    def check(logits, masks, **kw):
        loss = jax.block_until_ready(ts_loss(logits, masks, **kw))
        ref = jax.block_until_ready(_reference(logits, masks))
        assert np.allclose(np.asarray(loss), np.asarray(ref),
                           rtol=1e-5, atol=1e-6), (float(loss), float(ref))

    # 1) Aligned NCHW logits + binary masks (fully zero-copy, single block).
    logits = jax.random.normal(keys[0], (2, 4, 16, 16), dtype=jnp.float32)
    masks = jax.random.bernoulli(keys[1], 0.5, (2, 4, 16, 16)).astype(jnp.float32)
    check(logits, masks)

    # 2) Ragged element count (exercises the plain-JAX tail path).
    logits2 = jax.random.normal(keys[2], (2, 3, 13, 17), dtype=jnp.float32)
    masks2 = jax.random.bernoulli(keys[3], 0.3, (2, 3, 13, 17)).astype(jnp.float32)
    check(logits2, masks2)

    # 3) Exercises the in-kernel sub-tile fori_loop + static remainder chunk.
    logits3 = jax.random.normal(keys[4], (2, 4, 48, 48), dtype=jnp.float32)
    masks3 = jax.random.bernoulli(keys[5], 0.4, (2, 4, 48, 48)).astype(jnp.float32)
    check(logits3, masks3)

    # 4) Multi-block parallel grid with a partial last block (small block cap).
    logits4 = jax.random.normal(keys[6], (2, 4, 20, 32), dtype=jnp.float32)
    masks4 = jax.random.bernoulli(keys[7], 0.6, (2, 4, 20, 32)).astype(jnp.float32)
    check(logits4, masks4, max_block_rows=16)

    # 5) Native bf16 logits streamed directly (cast inside the kernel).
    logits5 = jax.random.normal(keys[8], (2, 4, 16, 16), dtype=jnp.bfloat16)
    masks5 = jax.random.bernoulli(keys[9], 0.5, (2, 4, 16, 16)).astype(jnp.float32)
    check(logits5, masks5)

    print("KERNEL_OK")
</pallas_src>

<mosaic_0001>
module attributes {stable_mosaic.version = 11 : i64} {
  func.func @_ts_partial_kernel(%arg0: i32, %arg1: memref<16x128xf32, #tpu.memory_space<vmem>>, %arg2: memref<16x128xf32, #tpu.memory_space<vmem>>, %arg3: memref<1x8x128xf32, #tpu.memory_space<vmem>>, %arg4: memref<1x8x128xf32, #tpu.memory_space<vmem>>) attributes {dimension_semantics = [#tpu.dimension_semantics<parallel>], iteration_bounds = array<i64: 1>, scalar_prefetch = 0 : i64, scratch_operands = 0 : i64, tpu.core_type = #tpu.core_type<tc>, window_params = [{transform_indices = @transform_0, window_bounds = array<i64: 16, 128>}, {transform_indices = @transform_1, window_bounds = array<i64: 16, 128>}, {transform_indices = @transform_2, window_bounds = array<i64: 1, 8, 128>}, {transform_indices = @transform_3, window_bounds = array<i64: 1, 8, 128>}]} {
    %cst = arith.constant 0.000000e+00 : f32
    %0 = vector.broadcast %cst : f32 to vector<8x128xf32>
    %c0 = arith.constant 0 : index
    %c0_0 = arith.constant 0 : index
    %1 = vector.load %arg1[%c0, %c0_0] : memref<16x128xf32, #tpu.memory_space<vmem>>, vector<16x128xf32>
    %c0_1 = arith.constant 0 : index
    %c0_2 = arith.constant 0 : index
    %2 = vector.load %arg2[%c0_1, %c0_2] : memref<16x128xf32, #tpu.memory_space<vmem>>, vector<16x128xf32>
    %cst_3 = arith.constant 5.000000e-01 : f32
    %3 = vector.broadcast %cst_3 : f32 to vector<16x128xf32>
    %4 = arith.mulf %3, %1 : vector<16x128xf32>
    %5 = math.tanh %4 : vector<16x128xf32>
    %cst_4 = arith.constant 5.000000e-01 : f32
    %6 = vector.broadcast %cst_4 : f32 to vector<16x128xf32>
    %7 = arith.mulf %6, %5 : vector<16x128xf32>
    %cst_5 = arith.constant 5.000000e-01 : f32
    %8 = vector.broadcast %cst_5 : f32 to vector<16x128xf32>
    %9 = arith.addf %7, %8 : vector<16x128xf32>
    %10 = arith.mulf %9, %2 : vector<16x128xf32>
    %11 = vector.shape_cast %10 : vector<16x128xf32> to vector<2x8x128xf32>
    %cst_6 = arith.constant dense<0.000000e+00> : vector<8x128xf32>
    %12 = vector.multi_reduction <add>, %11, %cst_6 [0] : vector<2x8x128xf32> to vector<8x128xf32>
    %13 = arith.addf %9, %2 : vector<16x128xf32>
    %14 = vector.shape_cast %13 : vector<16x128xf32> to vector<2x8x128xf32>
    %cst_7 = arith.constant dense<0.000000e+00> : vector<8x128xf32>
    %15 = vector.multi_reduction <add>, %14, %cst_7 [0] : vector<2x8x128xf32> to vector<8x128xf32>
    %16 = arith.addf %0, %12 : vector<8x128xf32>
    %17 = arith.addf %0, %15 : vector<8x128xf32>
    %c0_8 = arith.constant 0 : index
    %c0_9 = arith.constant 0 : index
    %c0_10 = arith.constant 0 : index
    %18 = vector.load %arg3[%c0_8, %c0_9, %c0_10] : memref<1x8x128xf32, #tpu.memory_space<vmem>>, vector<1x8x128xf32>
    %19 = vector.shape_cast %18 : vector<1x8x128xf32> to vector<8x128xf32>
    %20 = vector.shape_cast %16 : vector<8x128xf32> to vector<1x8x128xf32>
    tpu.vector_store %arg3[%c0_8, %c0_9, %c0_10], %20 {strides = array<i32>} : memref<1x8x128xf32, #tpu.memory_space<vmem>>, vector<1x8x128xf32>,
    %c0_11 = arith.constant 0 : index
    %c0_12 = arith.constant 0 : index
    %c0_13 = arith.constant 0 : index
    %21 = vector.load %arg4[%c0_11, %c0_12, %c0_13] : memref<1x8x128xf32, #tpu.memory_space<vmem>>, vector<1x8x128xf32>
    %22 = vector.shape_cast %21 : vector<1x8x128xf32> to vector<8x128xf32>
    %23 = vector.shape_cast %17 : vector<8x128xf32> to vector<1x8x128xf32>
    tpu.vector_store %arg4[%c0_11, %c0_12, %c0_13], %23 {strides = array<i32>} : memref<1x8x128xf32, #tpu.memory_space<vmem>>, vector<1x8x128xf32>,
    return
  }
  func.func @transform_0(%arg0: i32) -> (i32, i32) {
    %c0_i32 = arith.constant 0 : i32
    %c0_i32_0 = arith.constant 0 : i32
    return %arg0, %c0_i32 : i32, i32
  }
  func.func @transform_1(%arg0: i32) -> (i32, i32) {
    %c0_i32 = arith.constant 0 : i32
    %c0_i32_0 = arith.constant 0 : i32
    return %arg0, %c0_i32 : i32, i32
  }
  func.func @transform_2(%arg0: i32) -> (i32, i32, i32) {
    %c0_i32 = arith.constant 0 : i32
    %c0_i32_0 = arith.constant 0 : i32
    %c0_i32_1 = arith.constant 0 : i32
    return %arg0, %c0_i32, %c0_i32_0 : i32, i32, i32
  }
  func.func @transform_3(%arg0: i32) -> (i32, i32, i32) {
    %c0_i32 = arith.constant 0 : i32
    %c0_i32_0 = arith.constant 0 : i32
    %c0_i32_1 = arith.constant 0 : i32
    return %arg0, %c0_i32, %c0_i32_0 : i32, i32, i32
  }
}

</mosaic_0001>

<bundles_post_ra>
// kernel: tpu_custom_call.1
= control target key start
LH: loop header
LB: loop body
LE: loop exit
PB: predicated region body
PF: predicated region fallthrough
CT: control target
= control target key end

     0   :  { %9 = vsyncpa [#allocation3], 0  ;;  %s231_s0 = inlined_call_operand.hbm [shape: f32[16,128], index: 0, kind: input, shape index: {}]   ;;  %s232_s1 = inlined_call_operand.hbm [shape: f32[16,128], index: 1, kind: input, shape index: {}]   ;;  %s233_s2 = inlined_call_operand.hbm [shape: f32[1,8,128], index: 2, kind: output, shape index: {0}]   ;;  %s234_s3 = inlined_call_operand.hbm [shape: f32[1,8,128], index: 3, kind: output, shape index: {1}]  }
   0x1   :  { %10 = vsyncpa [#allocation6], 0 }
   0x2   :  { %11 = vsyncpa [#allocation4], 0 }
   0x3   :  { %12 = vsyncpa [#allocation9], 0  ;;  %s193_s12 = smov [#allocation2]  }
   0x4   :  { %s18_s13 = sshll.u32 %s193_s12, 4  ;;  %s19_s13 = int_to_ptr.vmem [resolvable:$true] %s18_s13 }
   0x5   :  { %s113_s14 = scalar_lea.vmem %s19_s13, 256  ;;  %p118_p1 = scmp.lt.s32.totalorder %s19_s13, %s19_s13 }
   0x6   :  { %p114_p0 = scmp.ne.s32.totalorder %s19_s13, %s113_s14  ;;  %p119_p2 = scmp.lt.s32.totalorder %s113_s14, %s113_s14 }
   0x8   :  { %p120_p3 = por %p119_p2, %p118_p1 }
   0xa   :  { %p121_p4 = pnand %p120_p3, %p114_p0 }
   0xc   :  { %124 = shalt.err (!%p121_p4)
}
   0xd   :  { %s194_s15 = smov 128   ;;  %s195_s16 = smov 8  }
   0xe   :  { %24 = dma.hbm_to_vmem [thread:$0]  %s231_s0, 256, %s19_s13, [#allocation3], %s194_s15, %s194_s15, %s195_s16  }
   0xf   :  { %s196_s19 = smov [#allocation5]  }
  0x10   :  { %s30_s20 = sshll.u32 %s196_s19, 4  ;;  %s31_s20 = int_to_ptr.vmem [resolvable:$true] %s30_s20 }
  0x11   :  { %s133_s21 = scalar_lea.vmem %s31_s20, 256  ;;  %p138_p6 = scmp.lt.s32.totalorder %s31_s20, %s31_s20 }
  0x12   :  { %p134_p5 = scmp.ne.s32.totalorder %s31_s20, %s133_s21  ;;  %p139_p7 = scmp.lt.s32.totalorder %s133_s21, %s133_s21 }
  0x14   :  { %p140_p8 = por %p139_p7, %p138_p6 }
  0x16   :  { %p141_p9 = pnand %p140_p8, %p134_p5 }
  0x18   :  { %144 = shalt.err (!%p141_p9)
}
  0x19   :  { %36 = dma.hbm_to_vmem [thread:$0]  %s232_s1, 256, %s31_s20, [#allocation6], %s194_s15, %s194_s15, %s195_s16  }
  0x1a   :  { %185 = dma.done.wait [#allocation3], 256  }
  0x1b   :  { %186 = vsyncadd [#allocation3], 4294967040 }
  0x1c   :  { %187 = dma.done.wait [#allocation6], 256  }
  0x1d   :  { %188 = vsyncadd [#allocation6], 4294967040  ;;  %v43_v0 = vld [vmem:[#allocation2] sm:$0xff]  ;;  %v44_v1 = vld [vmem:[#allocation2 + $0x8] sm:$0xff]  ;;  %s197_s0 = smov [#allocation7]   ;;  %s198_s24 = smov [#allocation8]  }
  0x1e   :  { %v47_v2 = vmul.f32 0.5, %v43_v0  ;;  %v48_v3 = vmul.f32 0.5, %v44_v1  ;;  %v45_v7 = vld [vmem:[#allocation5] sm:$0xff]  ;;  %v46_v9 = vld [vmem:[#allocation5 + $0x8] sm:$0xff]  ;;  %s71_s1 = sshll.u32 %s197_s0, 4  ;;  %s81_s25 = sshll.u32 %s198_s24, 4  ;;  %s72_s1 = int_to_ptr.vmem [resolvable:$true] %s71_s1  ;;  %s82_s25 = int_to_ptr.vmem [resolvable:$true] %s81_s25 }
  0x1f   :  { %s145_s26 = scalar_lea.vmem %s72_s1, 128  ;;  %p150_p11 = scmp.lt.s32.totalorder %s72_s1, %s72_s1 }
  0x20   :  { %101 = vtanh.f32 %v47_v2  ;;  %p146_p10 = scmp.ne.s32.totalorder %s72_s1, %s145_s26  ;;  %p151_p12 = scmp.lt.s32.totalorder %s145_s26, %s145_s26 }
  0x21   :  { %103 = vtanh.f32 %v48_v3 }
  0x22   :  { %p152_p13 = por %p151_p12, %p150_p11 }
  0x24   :  { %p153_p0 = pnand %p152_p13, %p146_p10 }
  0x2d   :  { %v102_v4 = vpop.eup %101 }
  0x2e   :  { %v104_v5 = vpop.eup %103  ;;  %v51_v6 = vmul.f32 0.5, %v102_v4 }
  0x2f   :  { %v52_v8 = vmul.f32 0.5, %v104_v5 }
  0x30   :  { %v53_v10 = vadd.f32 0.5, %v51_v6 }
  0x31   :  { %v54_v11 = vadd.f32 0.5, %v52_v8 }
  0x32   :  { %v55_v12 = vmul.f32 %v53_v10, %v45_v7  ;;  %v58_v13 = vadd.f32 %v53_v10, %v45_v7 }
  0x33   :  { %v56_v14 = vmul.f32 %v54_v11, %v46_v9  ;;  %v59_v15 = vadd.f32 %v54_v11, %v46_v9 }
  0x35   :  { %v57_v16 = vadd.f32 %v56_v14, %v55_v12  ;;  %v60_v17 = vadd.f32 %v59_v15, %v58_v13 }
  0x37   :  { %63 = vst [vmem:[#allocation7] sm:$0xff] %v57_v16  ;;  %64 = vst [vmem:[#allocation8] sm:$0xff] %v60_v17 }
  0x38   :  { %156 = shalt.err (!%p153_p0)
}
  0x39   :  { %74 = dma.vmem_to_hbm [thread:$0]  %s72_s1, 128, %s233_s2, [#allocation4]  }
  0x3a   :  { %s165_s29 = scalar_lea.vmem %s82_s25, 128  ;;  %p170_p2 = scmp.lt.s32.totalorder %s82_s25, %s82_s25 }
  0x3b   :  { %p166_p1 = scmp.ne.s32.totalorder %s82_s25, %s165_s29  ;;  %p171_p3 = scmp.lt.s32.totalorder %s165_s29, %s165_s29 }
  0x3d   :  { %p172_p4 = por %p171_p3, %p170_p2 }
  0x3f   :  { %p173_p5 = pnand %p172_p4, %p166_p1 }
  0x41   :  { %176 = shalt.err (!%p173_p5)
}
  0x42   :  { %84 = dma.vmem_to_hbm [thread:$0]  %s82_s25, 128, %s234_s3, [#allocation9]  }
  0x43   :  { %189 = dma.done.wait [#allocation4], 128  }
  0x44   :  { %190 = vsyncadd [#allocation4], 4294967168 }
  0x45   :  { %191 = dma.done.wait [#allocation9], 128  }
  0x46   :  { %192 = vsyncadd [#allocation9], 4294967168 }
  0x47   :  { %91 = vsyncpa [#allocation3], 1 }
  0x48   :  { %92 = vsyncpa [#allocation6], 1 }
  0x49   :  { %93 = vsyncpa [#allocation4], 1 }
  0x4a   :  { %94 = vsyncpa [#allocation9], 1 }

</bundles_post_ra>
